<compile_context>
chip_gen: v5e
topology: v5e:2x2
jax: 0.10.0
libtpu: 0.0.40
codegen_flags: <defaults>
</compile_context>

<pallas_src>
import functools

import numpy as np
import jax
import jax.numpy as jnp
from jax.experimental import pallas as pl
from jax.experimental.pallas import tpu as pltpu

_LANE = 128
_SUB = 8


# ----------------------------------------------------------------------------
# Fused kernel:
#   grid = (B, rows // ts), both axes "arbitrary" (shared accumulator scratch)
#   steady state : sigmoid + mul/add on a dense (C, ts, 128) tile, folded to
#                  (C, 8, 128) in-register, += into two small VMEM accumulators
#   epilogue     : per-channel dice, channel weighting, weighted CE on (B, K),
#                  uncertainty-weighted combination; writes 4 tiny outputs
# ----------------------------------------------------------------------------
def _fused_multitask_kernel(
    p_ref, t_ref, wseg_ref, cls_ref, oh_ref, wcls_ref, vars_ref,   # inputs
    loss_ref, segl_ref, mgmt_ref, perch_ref,                       # outputs
    inter_ref, denom_ref,                                          # scratch accs
    *, hw, ts, fold, needs_mask, eps):
    b = pl.program_id(0)
    j = pl.program_id(1)
    c = inter_ref.shape[0]

    @pl.when((b == 0) & (j == 0))
    def _init():
        inter_ref[...] = jnp.zeros_like(inter_ref)
        denom_ref[...] = jnp.zeros_like(denom_ref)

    # ---- steady state: lane- and sublane-dense partial sums ------------------
    def _accum(masked):
        p = jax.nn.sigmoid(p_ref[...].astype(jnp.float32))   # (C, ts, 128)
        t = t_ref[...].astype(jnp.float32)                   # (C, ts, 128)
        if masked:  # static: only traced for the ragged last tile path
            row = jax.lax.broadcasted_iota(jnp.int32, (c, ts, _LANE), 1)
            lane = jax.lax.broadcasted_iota(jnp.int32, (c, ts, _LANE), 2)
            elem = (j * ts + row) * _LANE + lane
            valid = elem < hw
            p = jnp.where(valid, p, 0.0)
            t = jnp.where(valid, t, 0.0)
        prod = p * t
        den = p + t                      # merged psum + tsum accumulator
        if fold:
            # tile-aligned split of the sublane axis -> pure VALU vreg adds
            prod = jnp.sum(prod.reshape(c, ts // _SUB, _SUB, _LANE), axis=1)
            den = jnp.sum(den.reshape(c, ts // _SUB, _SUB, _LANE), axis=1)
        inter_ref[...] += prod
        denom_ref[...] += den

    if needs_mask:
        last_j = pl.num_programs(1) - 1

        @pl.when(j == last_j)
        def _masked_tile():
            _accum(True)

        @pl.when(j != last_j)
        def _plain_tile():
            _accum(False)
    else:
        _accum(False)

    # ---- epilogue: dice + weighted CE + uncertainty combination --------------
    @pl.when((b == pl.num_programs(0) - 1) & (j == pl.num_programs(1) - 1))
    def _finalize():
        # the only cross-lane / cross-sublane reductions in the whole kernel
        inter = jnp.sum(jnp.sum(inter_ref[...], axis=2, keepdims=True), axis=1)  # (C,1)
        denom = jnp.sum(jnp.sum(denom_ref[...], axis=2, keepdims=True), axis=1)  # (C,1)
        dice = 1.0 - (2.0 * inter + eps) / (denom + eps)         # (C, 1)
        per_ch = wseg_ref[...].astype(jnp.float32) * dice        # (C, 1)
        seg_loss = jnp.sum(per_ch, keepdims=True)                # (1, 1)

        # class-weighted cross-entropy (PyTorch weighted 'mean' semantics)
        x = cls_ref[...].astype(jnp.float32)                     # (B, K)
        m = jnp.max(x, axis=1, keepdims=True)
        lse = jnp.log(jnp.sum(jnp.exp(x - m), axis=1, keepdims=True)) + m
        logp = x - lse
        oh = oh_ref[...].astype(jnp.float32)                     # (B, K)
        w = wcls_ref[...].astype(jnp.float32)                    # (1, K)
        per_sample = -jnp.sum(oh * w * logp, axis=1, keepdims=True)   # (B, 1)
        wsamp = jnp.sum(oh * w, axis=1, keepdims=True)                # (B, 1)
        mgmt_loss = jnp.sum(per_sample, keepdims=True) / jnp.sum(wsamp, keepdims=True)

        # uncertainty-weighted combination: 0.5*L/var^2 + log(var), summed
        v = vars_ref[...].astype(jnp.float32)                    # (1, 2)
        v0 = v[:, 0:1]
        v1 = v[:, 1:2]
        seg1 = 0.5 * seg_loss / (v0 * v0) + jnp.log(v0)
        mgmt1 = 0.5 * mgmt_loss / (v1 * v1) + jnp.log(v1)

        loss_ref[...] = seg1 + mgmt1
        segl_ref[...] = seg_loss
        mgmt_ref[...] = mgmt_loss
        perch_ref[...] = per_ch


def multitask_loss_forward(outputs, targets, weights, task_vars, *,
                           ts_max=1024, eps=1e-6,
                           vmem_budget=24 * 1024 * 1024):
    """MultiTaskLossWrapper1.forward equivalent (single pallas_call)."""
    seg_logits, cls_logits = outputs
    seg_targets, labels = targets
    w_seg, w_cls = weights

    B, C, H, W = seg_logits.shape
    HW = H * W
    Bc, K = cls_logits.shape
    onehot = jax.nn.one_hot(labels, K, dtype=jnp.float32)

    # ---- choose a sublane-dense tile (C, ts, 128), ts multiple of 8 ----------
    rows = pl.cdiv(HW, _LANE)
    if rows <= _SUB:
        ts = rows                                   # full-extent (small) tile
    else:
        itemsize = max(jnp.dtype(seg_logits.dtype).itemsize,
                       jnp.dtype(seg_targets.dtype).itemsize)
        acc_bytes = 2 * C * _SUB * _LANE * 4        # two (C, 8, 128) f32 accs
        per_row_bytes = 2 * 2 * C * _LANE * itemsize  # 2 inputs, double-buffered
        ts_fit = max(_SUB, (vmem_budget - acc_bytes) // per_row_bytes)
        ts = min(ts_max, ts_fit, ((rows + _SUB - 1) // _SUB) * _SUB)
        ts = (ts // _SUB) * _SUB
    n_j = pl.cdiv(rows, ts)
    rows_pad = n_j * ts
    HW_pad = rows_pad * _LANE

    # free reshape of contiguous NCHW; pad the flat HW axis only when ragged
    p3 = seg_logits.reshape(B, C, HW)
    t3 = seg_targets.reshape(B, C, HW)
    if HW_pad != HW:
        pad = HW_pad - HW
        p3 = jnp.pad(p3, ((0, 0), (0, 0), (0, pad)))
        t3 = jnp.pad(t3, ((0, 0), (0, 0), (0, pad)))
    p4 = p3.reshape(B, C, rows_pad, _LANE)
    t4 = t3.reshape(B, C, rows_pad, _LANE)

    fold = (ts % _SUB == 0) and (ts > _SUB)
    acc_rows = _SUB if fold else ts
    needs_mask = HW_pad != HW

    kernel = functools.partial(_fused_multitask_kernel, hw=HW, ts=ts,
                               fold=fold, needs_mask=needs_mask, eps=eps)

    seg_block = pl.BlockSpec((None, C, ts, _LANE), lambda b, j: (b, 0, j, 0))
    resident = lambda shape: pl.BlockSpec(shape, lambda b, j: (0, 0))

    loss, seg_loss, mgmt_loss, per_ch = pl.pallas_call(
        kernel,
        out_shape=(
            jax.ShapeDtypeStruct((1, 1), jnp.float32),   # combined loss
            jax.ShapeDtypeStruct((1, 1), jnp.float32),   # seg_loss
            jax.ShapeDtypeStruct((1, 1), jnp.float32),   # mgmt_loss
            jax.ShapeDtypeStruct((C, 1), jnp.float32),   # per-channel weighted dice
        ),
        grid_spec=pltpu.PrefetchScalarGridSpec(
            num_scalar_prefetch=0,
            grid=(B, n_j),
            in_specs=[
                seg_block,                      # seg logits tile  (C, ts, 128)
                seg_block,                      # seg targets tile (C, ts, 128)
                resident((C, 1)),               # seg channel weights
                resident((Bc, K)),              # cls logits
                resident((Bc, K)),              # one-hot labels
                resident((1, K)),               # cls class weights
                resident((1, 2)),               # task uncertainty vars
            ],
            out_specs=[
                resident((1, 1)),
                resident((1, 1)),
                resident((1, 1)),
                resident((C, 1)),
            ],
            scratch_shapes=[pltpu.VMEM((C, acc_rows, _LANE), jnp.float32)] * 2,
        ),
        compiler_params=pltpu.CompilerParams(
            # shared accumulator scratch => both axes must stay sequential
            dimension_semantics=("arbitrary", "arbitrary"),
            vmem_limit_bytes=32 * 1024 * 1024,
        ),
    )(p4, t4,
      w_seg.reshape(C, 1).astype(jnp.float32),
      cls_logits.astype(jnp.float32), onehot,
      w_cls.reshape(1, K).astype(jnp.float32),
      task_vars.reshape(1, 2).astype(jnp.float32))

    return (loss[0, 0], seg_loss[0, 0], mgmt_loss[0, 0],
            per_ch[0, 0], per_ch[1, 0], per_ch[2, 0],
            task_vars[0], task_vars[1])


# ----------------------------------------------------------------------------
# Pure-JAX reference (same synthesized loss_fn semantics) for verification.
# ----------------------------------------------------------------------------
def reference_forward(outputs, targets, weights, task_vars, eps=1e-6):
    p = jax.nn.sigmoid(outputs[0].astype(jnp.float32))
    t = targets[0].astype(jnp.float32)
    inter = jnp.sum(p * t, axis=(0, 2, 3))
    psum = jnp.sum(p, axis=(0, 2, 3))
    tsum = jnp.sum(t, axis=(0, 2, 3))
    dice = 1.0 - (2.0 * inter + eps) / (psum + tsum + eps)
    per_ch = weights[0].astype(jnp.float32) * dice
    loss1, loss2, loss3 = per_ch[0], per_ch[1], per_ch[2]
    seg_loss = jnp.sum(per_ch)

    logits = outputs[1].astype(jnp.float32)
    logp = jax.nn.log_softmax(logits, axis=-1)
    oh = jax.nn.one_hot(targets[1], logits.shape[-1], dtype=jnp.float32)
    w = weights[1].astype(jnp.float32)[None, :]
    per = -jnp.sum(oh * w * logp, axis=-1)
    mgmt_loss = jnp.sum(per) / jnp.sum(jnp.sum(oh * w, axis=-1))

    v0, v1 = task_vars[0], task_vars[1]
    seg1 = 0.5 * seg_loss / (v0 * v0) + jnp.log(v0)
    mgmt1 = 0.5 * mgmt_loss / (v1 * v1) + jnp.log(v1)
    loss = seg1 + mgmt1
    return (loss, seg_loss, mgmt_loss, loss1, loss2, loss3, v0, v1)


def _run_case(seed_tag, B, C, H, W, K, **kwargs):
    key = jax.random.fold_in(jax.random.PRNGKey(0), seed_tag)
    kseg, ktar, kcls, klab, kw0, kw1, kv = jax.random.split(key, 7)

    seg_logits = jax.random.normal(kseg, (B, C, H, W), jnp.float32)
    seg_targets = (jax.random.normal(ktar, (B, C, H, W)) > 0.0).astype(jnp.float32)
    cls_logits = jax.random.normal(kcls, (B, K), jnp.float32)
    labels = jax.random.randint(klab, (B,), 0, K)
    w_seg = jax.random.uniform(kw0, (C,), minval=0.5, maxval=1.5)
    w_cls = jax.random.uniform(kw1, (K,), minval=0.5, maxval=1.5)
    # nn.Parameter(torch.randn(task_num)); kept strictly positive so log(vars)
    # is finite in this synthetic demo (see TODO about parameterization).
    task_vars = jnp.abs(jax.random.normal(kv, (2,), jnp.float32)) + 0.5

    outputs = (seg_logits, cls_logits)
    targets = (seg_targets, labels)
    weights = (w_seg, w_cls)

    outs = multitask_loss_forward(outputs, targets, weights, task_vars, **kwargs)
    outs = jax.block_until_ready(outs)
    ref = reference_forward(outputs, targets, weights, task_vars)
    for got, want in zip(outs, ref):
        assert np.allclose(np.asarray(got), np.asarray(want),
                           rtol=1e-4, atol=1e-5), (seed_tag, got, want)


if __name__ == "__main__":
    # 1) tiny dense case (HW multiple of 128, rows <= 8): single full-extent tile
    _run_case(1, B=2, C=3, H=16, W=16, K=4)
    # 2) ragged HW (1600 -> padded to 2048): exercises fold + last-tile mask
    _run_case(2, B=2, C=3, H=40, W=40, K=4)
    # 3) forced small tile (ts_max=16): exercises multi-step accumulation + fold
    _run_case(3, B=2, C=3, H=64, W=64, K=4, ts_max=16)

    print("KERNEL_OK")
</pallas_src>

<mosaic_0001>
module attributes {stable_mosaic.version = 11 : i64} {
  func.func @_fused_multitask_kernel(%arg0: i32, %arg1: i32, %arg2: memref<1x3x2x128xf32, #tpu.memory_space<vmem>>, %arg3: memref<1x3x2x128xf32, #tpu.memory_space<vmem>>, %arg4: memref<3x1xf32, #tpu.memory_space<vmem>>, %arg5: memref<2x4xf32, #tpu.memory_space<vmem>>, %arg6: memref<2x4xf32, #tpu.memory_space<vmem>>, %arg7: memref<1x4xf32, #tpu.memory_space<vmem>>, %arg8: memref<1x2xf32, #tpu.memory_space<vmem>>, %arg9: memref<1x1xf32, #tpu.memory_space<vmem>>, %arg10: memref<1x1xf32, #tpu.memory_space<vmem>>, %arg11: memref<1x1xf32, #tpu.memory_space<vmem>>, %arg12: memref<3x1xf32, #tpu.memory_space<vmem>>, %arg13: memref<3x2x128xf32, #tpu.memory_space<vmem>>, %arg14: memref<3x2x128xf32, #tpu.memory_space<vmem>>) attributes {dimension_semantics = [#tpu.dimension_semantics<arbitrary>, #tpu.dimension_semantics<arbitrary>], iteration_bounds = array<i64: 2, 1>, scalar_prefetch = 0 : i64, scratch_operands = 2 : i64, tpu.core_type = #tpu.core_type<tc>, window_params = [{transform_indices = @transform_0, window_bounds = array<i64: 1, 3, 2, 128>}, {transform_indices = @transform_1, window_bounds = array<i64: 1, 3, 2, 128>}, {pipeline_mode = #tpu.pipeline_mode<synchronous>, transform_indices = @transform_2, window_bounds = array<i64: 3, 1>}, {pipeline_mode = #tpu.pipeline_mode<synchronous>, transform_indices = @transform_3, window_bounds = array<i64: 2, 4>}, {pipeline_mode = #tpu.pipeline_mode<synchronous>, transform_indices = @transform_4, window_bounds = array<i64: 2, 4>}, {pipeline_mode = #tpu.pipeline_mode<synchronous>, transform_indices = @transform_5, window_bounds = array<i64: 1, 4>}, {pipeline_mode = #tpu.pipeline_mode<synchronous>, transform_indices = @transform_6, window_bounds = array<i64: 1, 2>}, {pipeline_mode = #tpu.pipeline_mode<synchronous>, transform_indices = @transform_7, window_bounds = array<i64: 1, 1>}, {pipeline_mode = #tpu.pipeline_mode<synchronous>, transform_indices = @transform_8, window_bounds = array<i64: 1, 1>}, {pipeline_mode = #tpu.pipeline_mode<synchronous>, transform_indices = @transform_9, window_bounds = array<i64: 1, 1>}, {pipeline_mode = #tpu.pipeline_mode<synchronous>, transform_indices = @transform_10, window_bounds = array<i64: 3, 1>}]} {
    %c0_i32 = arith.constant 0 : i32
    %0 = arith.cmpi eq, %arg0, %c0_i32 : i32
    %c0_i32_0 = arith.constant 0 : i32
    %1 = arith.cmpi eq, %arg1, %c0_i32_0 : i32
    %2 = arith.andi %0, %1 : i1
    %3 = arith.extui %2 : i1 to i32
    %c0_i32_1 = arith.constant 0 : i32
    %4 = arith.cmpi ne, %3, %c0_i32_1 : i32
    scf.if %4 {
      %cst_23 = arith.constant 0.000000e+00 : f32
      %27 = vector.broadcast %cst_23 : f32 to vector<3x2x128xf32>
      %c0_24 = arith.constant 0 : index
      %c0_25 = arith.constant 0 : index
      %c0_26 = arith.constant 0 : index
      %28 = vector.load %arg13[%c0_24, %c0_25, %c0_26] : memref<3x2x128xf32, #tpu.memory_space<vmem>>, vector<3x2x128xf32>
      tpu.vector_store %arg13[%c0_24, %c0_25, %c0_26], %27 {strides = array<i32>} : memref<3x2x128xf32, #tpu.memory_space<vmem>>, vector<3x2x128xf32>,
      %cst_27 = arith.constant 0.000000e+00 : f32
      %29 = vector.broadcast %cst_27 : f32 to vector<3x2x128xf32>
      %c0_28 = arith.constant 0 : index
      %c0_29 = arith.constant 0 : index
      %c0_30 = arith.constant 0 : index
      %30 = vector.load %arg14[%c0_28, %c0_29, %c0_30] : memref<3x2x128xf32, #tpu.memory_space<vmem>>, vector<3x2x128xf32>
      tpu.vector_store %arg14[%c0_28, %c0_29, %c0_30], %29 {strides = array<i32>} : memref<3x2x128xf32, #tpu.memory_space<vmem>>, vector<3x2x128xf32>,
    } else {
    }
    %c0 = arith.constant 0 : index
    %c0_2 = arith.constant 0 : index
    %c0_3 = arith.constant 0 : index
    %c0_4 = arith.constant 0 : index
    %5 = vector.load %arg2[%c0, %c0_2, %c0_3, %c0_4] : memref<1x3x2x128xf32, #tpu.memory_space<vmem>>, vector<1x3x2x128xf32>
    %6 = vector.shape_cast %5 : vector<1x3x2x128xf32> to vector<3x2x128xf32>
    %7 = arith.negf %6 : vector<3x2x128xf32>
    %8 = math.exp %7 : vector<3x2x128xf32>
    %cst = arith.constant 1.000000e+00 : f32
    %9 = vector.broadcast %cst : f32 to vector<3x2x128xf32>
    %10 = arith.addf %9, %8 : vector<3x2x128xf32>
    %11 = arith.divf %9, %10 : vector<3x2x128xf32>
    %c0_5 = arith.constant 0 : index
    %c0_6 = arith.constant 0 : index
    %c0_7 = arith.constant 0 : index
    %c0_8 = arith.constant 0 : index
    %12 = vector.load %arg3[%c0_5, %c0_6, %c0_7, %c0_8] : memref<1x3x2x128xf32, #tpu.memory_space<vmem>>, vector<1x3x2x128xf32>
    %13 = vector.shape_cast %12 : vector<1x3x2x128xf32> to vector<3x2x128xf32>
    %14 = arith.mulf %11, %13 : vector<3x2x128xf32>
    %15 = arith.addf %11, %13 : vector<3x2x128xf32>
    %c0_9 = arith.constant 0 : index
    %c0_10 = arith.constant 0 : index
    %c0_11 = arith.constant 0 : index
    %16 = vector.load %arg13[%c0_9, %c0_10, %c0_11] : memref<3x2x128xf32, #tpu.memory_space<vmem>>, vector<3x2x128xf32>
    %17 = arith.addf %16, %14 : vector<3x2x128xf32>
    %c0_12 = arith.constant 0 : index
    %c0_13 = arith.constant 0 : index
    %c0_14 = arith.constant 0 : index
    %18 = vector.load %arg13[%c0_12, %c0_13, %c0_14] : memref<3x2x128xf32, #tpu.memory_space<vmem>>, vector<3x2x128xf32>
    tpu.vector_store %arg13[%c0_12, %c0_13, %c0_14], %17 {strides = array<i32>} : memref<3x2x128xf32, #tpu.memory_space<vmem>>, vector<3x2x128xf32>,
    %c0_15 = arith.constant 0 : index
    %c0_16 = arith.constant 0 : index
    %c0_17 = arith.constant 0 : index
    %19 = vector.load %arg14[%c0_15, %c0_16, %c0_17] : memref<3x2x128xf32, #tpu.memory_space<vmem>>, vector<3x2x128xf32>
    %20 = arith.addf %19, %15 : vector<3x2x128xf32>
    %c0_18 = arith.constant 0 : index
    %c0_19 = arith.constant 0 : index
    %c0_20 = arith.constant 0 : index
    %21 = vector.load %arg14[%c0_18, %c0_19, %c0_20] : memref<3x2x128xf32, #tpu.memory_space<vmem>>, vector<3x2x128xf32>
    tpu.vector_store %arg14[%c0_18, %c0_19, %c0_20], %20 {strides = array<i32>} : memref<3x2x128xf32, #tpu.memory_space<vmem>>, vector<3x2x128xf32>,
    %c1_i32 = arith.constant 1 : i32
    %22 = arith.cmpi eq, %arg0, %c1_i32 : i32
    %c0_i32_21 = arith.constant 0 : i32
    %23 = arith.cmpi eq, %arg1, %c0_i32_21 : i32
    %24 = arith.andi %22, %23 : i1
    %25 = arith.extui %24 : i1 to i32
    %c0_i32_22 = arith.constant 0 : i32
    %26 = arith.cmpi ne, %25, %c0_i32_22 : i32
    scf.if %26 {
      %c0_23 = arith.constant 0 : index
      %c0_24 = arith.constant 0 : index
      %c0_25 = arith.constant 0 : index
      %27 = vector.load %arg13[%c0_23, %c0_24, %c0_25] : memref<3x2x128xf32, #tpu.memory_space<vmem>>, vector<3x2x128xf32>
      %cst_26 = arith.constant dense<0.000000e+00> : vector<3x2xf32>
      %28 = vector.multi_reduction <add>, %27, %cst_26 [2] : vector<3x2x128xf32> to vector<3x2xf32>
      %29 = vector.shape_cast %28 : vector<3x2xf32> to vector<3x2x1xf32>
      %cst_27 = arith.constant dense<0.000000e+00> : vector<3x1xf32>
      %30 = vector.multi_reduction <add>, %29, %cst_27 [1] : vector<3x2x1xf32> to vector<3x1xf32>
      %c0_28 = arith.constant 0 : index
      %c0_29 = arith.constant 0 : index
      %c0_30 = arith.constant 0 : index
      %31 = vector.load %arg14[%c0_28, %c0_29, %c0_30] : memref<3x2x128xf32, #tpu.memory_space<vmem>>, vector<3x2x128xf32>
      %cst_31 = arith.constant dense<0.000000e+00> : vector<3x2xf32>
      %32 = vector.multi_reduction <add>, %31, %cst_31 [2] : vector<3x2x128xf32> to vector<3x2xf32>
      %33 = vector.shape_cast %32 : vector<3x2xf32> to vector<3x2x1xf32>
      %cst_32 = arith.constant dense<0.000000e+00> : vector<3x1xf32>
      %34 = vector.multi_reduction <add>, %33, %cst_32 [1] : vector<3x2x1xf32> to vector<3x1xf32>
      %cst_33 = arith.constant 2.000000e+00 : f32
      %35 = vector.broadcast %cst_33 : f32 to vector<3x1xf32>
      %36 = arith.mulf %35, %30 : vector<3x1xf32>
      %cst_34 = arith.constant 9.99999997E-7 : f32
      %37 = vector.broadcast %cst_34 : f32 to vector<3x1xf32>
      %38 = arith.addf %36, %37 : vector<3x1xf32>
      %cst_35 = arith.constant 9.99999997E-7 : f32
      %39 = vector.broadcast %cst_35 : f32 to vector<3x1xf32>
      %40 = arith.addf %34, %39 : vector<3x1xf32>
      %41 = arith.divf %38, %40 : vector<3x1xf32>
      %cst_36 = arith.constant 1.000000e+00 : f32
      %42 = vector.broadcast %cst_36 : f32 to vector<3x1xf32>
      %43 = arith.subf %42, %41 : vector<3x1xf32>
      %c0_37 = arith.constant 0 : index
      %c0_38 = arith.constant 0 : index
      %44 = vector.load %arg4[%c0_37, %c0_38] : memref<3x1xf32, #tpu.memory_space<vmem>>, vector<3x1xf32>
      %45 = arith.mulf %44, %43 : vector<3x1xf32>
      %46 = vector.shape_cast %45 : vector<3x1xf32> to vector<1x3x1xf32>
      %cst_39 = arith.constant dense<0.000000e+00> : vector<1xf32>
      %47 = vector.multi_reduction <add>, %46, %cst_39 [1, 2] : vector<1x3x1xf32> to vector<1xf32>
      %48 = vector.shape_cast %47 : vector<1xf32> to vector<1x1x1xf32>
      %49 = vector.extract %48[0, 0, 0] : f32 from vector<1x1x1xf32>
      %50 = vector.broadcast %49 : f32 to vector<1x1xf32>
      %c0_40 = arith.constant 0 : index
      %c0_41 = arith.constant 0 : index
      %51 = vector.load %arg5[%c0_40, %c0_41] : memref<2x4xf32, #tpu.memory_space<vmem>>, vector<2x4xf32>
      %cst_42 = arith.constant dense<0xFF800000> : vector<2xf32>
      %52 = vector.multi_reduction <maximumf>, %51, %cst_42 [1] : vector<2x4xf32> to vector<2xf32>
      %53 = vector.shape_cast %52 : vector<2xf32> to vector<2x1xf32>
      %54 = vector.broadcast %53 : vector<2x1xf32> to vector<2x4xf32>
      %55 = arith.subf %51, %54 : vector<2x4xf32>
      %56 = math.exp %55 : vector<2x4xf32>
      %cst_43 = arith.constant dense<0.000000e+00> : vector<2xf32>
      %57 = vector.multi_reduction <add>, %56, %cst_43 [1] : vector<2x4xf32> to vector<2xf32>
      %58 = vector.shape_cast %57 : vector<2xf32> to vector<2x1xf32>
      %59 = math.log %58 : vector<2x1xf32>
      %60 = arith.addf %59, %53 : vector<2x1xf32>
      %61 = vector.broadcast %60 : vector<2x1xf32> to vector<2x4xf32>
      %62 = arith.subf %51, %61 : vector<2x4xf32>
      %c0_44 = arith.constant 0 : index
      %c0_45 = arith.constant 0 : index
      %63 = vector.load %arg6[%c0_44, %c0_45] : memref<2x4xf32, #tpu.memory_space<vmem>>, vector<2x4xf32>
      %c0_46 = arith.constant 0 : index
      %c0_47 = arith.constant 0 : index
      %64 = vector.load %arg7[%c0_46, %c0_47] : memref<1x4xf32, #tpu.memory_space<vmem>>, vector<1x4xf32>
      %65 = vector.broadcast %64 : vector<1x4xf32> to vector<2x4xf32>
      %66 = arith.mulf %63, %65 : vector<2x4xf32>
      %67 = arith.mulf %66, %62 : vector<2x4xf32>
      %cst_48 = arith.constant dense<0.000000e+00> : vector<2xf32>
      %68 = vector.multi_reduction <add>, %67, %cst_48 [1] : vector<2x4xf32> to vector<2xf32>
      %69 = vector.shape_cast %68 : vector<2xf32> to vector<2x1xf32>
      %cst_49 = arith.constant 0.000000e+00 : f32
      %70 = vector.broadcast %cst_49 : f32 to vector<2x1xf32>
      %71 = arith.subf %70, %69 : vector<2x1xf32>
      %72 = vector.broadcast %64 : vector<1x4xf32> to vector<2x4xf32>
      %73 = arith.mulf %63, %72 : vector<2x4xf32>
      %cst_50 = arith.constant dense<0.000000e+00> : vector<2xf32>
      %74 = vector.multi_reduction <add>, %73, %cst_50 [1] : vector<2x4xf32> to vector<2xf32>
      %75 = vector.shape_cast %74 : vector<2xf32> to vector<2x1xf32>
      %76 = vector.shape_cast %71 : vector<2x1xf32> to vector<1x2x1xf32>
      %cst_51 = arith.constant dense<0.000000e+00> : vector<1xf32>
      %77 = vector.multi_reduction <add>, %76, %cst_51 [1, 2] : vector<1x2x1xf32> to vector<1xf32>
      %78 = vector.shape_cast %77 : vector<1xf32> to vector<1x1x1xf32>
      %79 = vector.extract %78[0, 0, 0] : f32 from vector<1x1x1xf32>
      %80 = vector.broadcast %79 : f32 to vector<1x1xf32>
      %81 = vector.shape_cast %75 : vector<2x1xf32> to vector<1x2x1xf32>
      %cst_52 = arith.constant dense<0.000000e+00> : vector<1xf32>
      %82 = vector.multi_reduction <add>, %81, %cst_52 [1, 2] : vector<1x2x1xf32> to vector<1xf32>
      %83 = vector.shape_cast %82 : vector<1xf32> to vector<1x1x1xf32>
      %84 = vector.extract %83[0, 0, 0] : f32 from vector<1x1x1xf32>
      %85 = vector.broadcast %84 : f32 to vector<1x1xf32>
      %86 = arith.divf %80, %85 : vector<1x1xf32>
      %c0_53 = arith.constant 0 : index
      %c0_54 = arith.constant 0 : index
      %87 = vector.load %arg8[%c0_53, %c0_54] : memref<1x2xf32, #tpu.memory_space<vmem>>, vector<1x2xf32>
      %88 = vector.extract_strided_slice %87 {offsets = [0, 0], sizes = [1, 1], strides = [1, 1]} : vector<1x2xf32> to vector<1x1xf32>
      %89 = vector.extract_strided_slice %87 {offsets = [0, 1], sizes = [1, 1], strides = [1, 1]} : vector<1x2xf32> to vector<1x1xf32>
      %cst_55 = arith.constant 5.000000e-01 : f32
      %90 = vector.broadcast %cst_55 : f32 to vector<1x1xf32>
      %91 = arith.mulf %90, %50 : vector<1x1xf32>
      %92 = arith.mulf %88, %88 : vector<1x1xf32>
      %93 = arith.divf %91, %92 : vector<1x1xf32>
      %94 = math.log %88 : vector<1x1xf32>
      %95 = arith.addf %93, %94 : vector<1x1xf32>
      %cst_56 = arith.constant 5.000000e-01 : f32
      %96 = vector.broadcast %cst_56 : f32 to vector<1x1xf32>
      %97 = arith.mulf %96, %86 : vector<1x1xf32>
      %98 = arith.mulf %89, %89 : vector<1x1xf32>
      %99 = arith.divf %97, %98 : vector<1x1xf32>
      %100 = math.log %89 : vector<1x1xf32>
      %101 = arith.addf %99, %100 : vector<1x1xf32>
      %102 = arith.addf %95, %101 : vector<1x1xf32>
      %c0_57 = arith.constant 0 : index
      %c0_58 = arith.constant 0 : index
      %103 = vector.load %arg9[%c0_57, %c0_58] : memref<1x1xf32, #tpu.memory_space<vmem>>, vector<1x1xf32>
      tpu.vector_store %arg9[%c0_57, %c0_58], %102 {strides = array<i32>} : memref<1x1xf32, #tpu.memory_space<vmem>>, vector<1x1xf32>,
      %c0_59 = arith.constant 0 : index
      %c0_60 = arith.constant 0 : index
      %104 = vector.load %arg10[%c0_59, %c0_60] : memref<1x1xf32, #tpu.memory_space<vmem>>, vector<1x1xf32>
      tpu.vector_store %arg10[%c0_59, %c0_60], %50 {strides = array<i32>} : memref<1x1xf32, #tpu.memory_space<vmem>>, vector<1x1xf32>,
      %c0_61 = arith.constant 0 : index
      %c0_62 = arith.constant 0 : index
      %105 = vector.load %arg11[%c0_61, %c0_62] : memref<1x1xf32, #tpu.memory_space<vmem>>, vector<1x1xf32>
      tpu.vector_store %arg11[%c0_61, %c0_62], %86 {strides = array<i32>} : memref<1x1xf32, #tpu.memory_space<vmem>>, vector<1x1xf32>,
      %c0_63 = arith.constant 0 : index
      %c0_64 = arith.constant 0 : index
      %106 = vector.load %arg12[%c0_63, %c0_64] : memref<3x1xf32, #tpu.memory_space<vmem>>, vector<3x1xf32>
      tpu.vector_store %arg12[%c0_63, %c0_64], %45 {strides = array<i32>} : memref<3x1xf32, #tpu.memory_space<vmem>>, vector<3x1xf32>,
    } else {
    }
    return
  }
  func.func @transform_0(%arg0: i32, %arg1: i32) -> (i32, i32, i32, i32) {
    %c0_i32 = arith.constant 0 : i32
    %c0_i32_0 = arith.constant 0 : i32
    %c0_i32_1 = arith.constant 0 : i32
    return %arg0, %c0_i32, %arg1, %c0_i32_0 : i32, i32, i32, i32
  }
  func.func @transform_1(%arg0: i32, %arg1: i32) -> (i32, i32, i32, i32) {
    %c0_i32 = arith.constant 0 : i32
    %c0_i32_0 = arith.constant 0 : i32
    %c0_i32_1 = arith.constant 0 : i32
    return %arg0, %c0_i32, %arg1, %c0_i32_0 : i32, i32, i32, i32
  }
  func.func @transform_2(%arg0: i32, %arg1: i32) -> (i32, i32) {
    %c0_i32 = arith.constant 0 : i32
    %c0_i32_0 = arith.constant 0 : i32
    %c0_i32_1 = arith.constant 0 : i32
    return %c0_i32, %c0_i32_0 : i32, i32
  }
  func.func @transform_3(%arg0: i32, %arg1: i32) -> (i32, i32) {
    %c0_i32 = arith.constant 0 : i32
    %c0_i32_0 = arith.constant 0 : i32
    %c0_i32_1 = arith.constant 0 : i32
    return %c0_i32, %c0_i32_0 : i32, i32
  }
  func.func @transform_4(%arg0: i32, %arg1: i32) -> (i32, i32) {
    %c0_i32 = arith.constant 0 : i32
    %c0_i32_0 = arith.constant 0 : i32
    %c0_i32_1 = arith.constant 0 : i32
    return %c0_i32, %c0_i32_0 : i32, i32
  }
  func.func @transform_5(%arg0: i32, %arg1: i32) -> (i32, i32) {
    %c0_i32 = arith.constant 0 : i32
    %c0_i32_0 = arith.constant 0 : i32
    %c0_i32_1 = arith.constant 0 : i32
    return %c0_i32, %c0_i32_0 : i32, i32
  }
  func.func @transform_6(%arg0: i32, %arg1: i32) -> (i32, i32) {
    %c0_i32 = arith.constant 0 : i32
    %c0_i32_0 = arith.constant 0 : i32
    %c0_i32_1 = arith.constant 0 : i32
    return %c0_i32, %c0_i32_0 : i32, i32
  }
  func.func @transform_7(%arg0: i32, %arg1: i32) -> (i32, i32) {
    %c0_i32 = arith.constant 0 : i32
    %c0_i32_0 = arith.constant 0 : i32
    %c0_i32_1 = arith.constant 0 : i32
    return %c0_i32, %c0_i32_0 : i32, i32
  }
  func.func @transform_8(%arg0: i32, %arg1: i32) -> (i32, i32) {
    %c0_i32 = arith.constant 0 : i32
    %c0_i32_0 = arith.constant 0 : i32
    %c0_i32_1 = arith.constant 0 : i32
    return %c0_i32, %c0_i32_0 : i32, i32
  }
  func.func @transform_9(%arg0: i32, %arg1: i32) -> (i32, i32) {
    %c0_i32 = arith.constant 0 : i32
    %c0_i32_0 = arith.constant 0 : i32
    %c0_i32_1 = arith.constant 0 : i32
    return %c0_i32, %c0_i32_0 : i32, i32
  }
  func.func @transform_10(%arg0: i32, %arg1: i32) -> (i32, i32) {
    %c0_i32 = arith.constant 0 : i32
    %c0_i32_0 = arith.constant 0 : i32
    %c0_i32_1 = arith.constant 0 : i32
    return %c0_i32, %c0_i32_0 : i32, i32
  }
}

</mosaic_0001>

<bundles_post_ra>
// kernel: tpu_custom_call.1
= control target key start
LH: loop header
LB: loop body
LE: loop exit
PB: predicated region body
PF: predicated region fallthrough
CT: control target
= control target key end

     0   :  { %s1602_s0 = inlined_call_operand.hbm [shape: f32[2,3,2,128], index: 0, kind: input, shape index: {}]   ;;  %s1603_s1 = inlined_call_operand.hbm [shape: f32[2,3,2,128], index: 1, kind: input, shape index: {}]   ;;  %s1604_s2 = inlined_call_operand.vmem [shape: f32[3,1], index: 2, kind: input, shape index: {}]   ;;  %s1605_s3 = inlined_call_operand.vmem [shape: f32[2,4], index: 3, kind: input, shape index: {}]   ;;  %s1606_s4 = inlined_call_operand.vmem [shape: f32[2,4], index: 4, kind: input, shape index: {}]   ;;  %s1607_s5 = inlined_call_operand.vmem [shape: f32[1,4], index: 5, kind: input, shape index: {}]   ;;  %s1608_s6 = inlined_call_operand.vmem [shape: f32[1,2], index: 6, kind: input, shape index: {}]   ;;  %s1609_s7 = inlined_call_operand.hbm [shape: f32[1,1], index: 7, kind: output, shape index: {0}]   ;;  %s1610_s8 = inlined_call_operand.hbm [shape: f32[1,1], index: 8, kind: output, shape index: {1}]   ;;  %s1611_s9 = inlined_call_operand.hbm [shape: f32[1,1], index: 9, kind: output, shape index: {2}]   ;;  %s1612_s10 = inlined_call_operand.vmem [shape: f32[3,1], index: 10, kind: output, shape index: {3}]  }
   0x1   :  { %1617 = sst [smem:[#allocation21_spill]] %s1602_s0 }
   0x2   :  { %16 = vsyncpa [#allocation5], 0 }
   0x3   :  { %18 = vsyncpa [#allocation5 + $0x1], 0 }
   0x4   :  { %19 = vsyncpa [#allocation8], 0 }
   0x5   :  { %21 = vsyncpa [#allocation8 + $0x1], 0 }
   0x6   :  { %22 = vsyncpa [#allocation6], 0 }
   0x7   :  { %23 = vsyncpa [#allocation11], 0  ;;  %s1336_s13 = smov 0   ;;  %s1338_s14 = smov 0  }
   0x8   :  { %s1340_s15 = smov 0   ;;  %s1342_s16 = smov 0  }
   0x9   :  { %s1344_s17 = smov 0   ;;  %s1346_s18 = smov 0  }
   0xa LB: > { %1618 = sst [smem:[#allocation17_spill]] %s1260_s15  ;;  %s1613_s19 = sadd.s32 4294967295, %s1272_s18   ;;  %s1272_s18 = sphi %s1346_s18, %s29_s18   ;;  %s1268_s17 = sphi %s1344_s17, %s1650_s17   ;;  %s1264_s16 = sphi %s1342_s16, %s1649_s16   ;;  %s1260_s15 = sphi %s1340_s15, %s1648_s15   ;;  %s1256_s14 = sphi %s1338_s14, %s1652_s14   ;;  %s1252_s13 = sphi %s1336_s13, %s1651_s13  }
   0xb   : > { %1619 = sst [smem:[#allocation18_spill]] %s1268_s17  ;;  %s41_s20 = sadd.s32 1, %s1268_s17 }
   0xc   : > { %p43_p0 = scmp.ge.s32.totalorder %s41_s20, 2  ;;  %s50_s21 = sadd.s32 1, %s1260_s15 }
   0xd   : > { %p57_p1 = scmp.ne.s32.totalorder %s1260_s15, %s1256_s14  ;;  %p58_p2 = scmp.eq.s32.totalorder %s1272_s18, 0 }
   0xe   : > { %s1654_s20 = smov (%p43_p0, %s41_s20), 0  ;;  %p63_p4 = scmp.ne.s32.totalorder %s1256_s14, %s1252_s13 }
   0xf   : > { %1620 = sst [smem:[#allocation19_spill]] %s1654_s20  ;;  %p59_p3 = por %p58_p2, %p57_p1 }
  0x10   : > { %s45_s22 = ssub.s32 %s1268_s17, %s1654_s20  ;;  %p64_p5 = scmp.eq.s32.totalorder %s1613_s19, 0 }
  0x11   : > { %p48_p6 = scmp.eq.s32.totalorder %s45_s22, 0  ;;  %p975_p8 = scmp.lt.s32.totalorder %s1272_s18, 2 }
  0x12   : > { %p1377_p7 = por %p64_p5, %p63_p4  ;;  %s1386_s25 = sand.u32 1, %s1260_s15  }
  0x13   : > { %s1383_s24 = scalar_select %p48_p6, %s1260_s15, %s50_s21  }
  0x14   : > { %s942_s26 = smul.u32 6, %s1268_s17  ;;  %s1623_s0 = sld [smem:[#allocation21_spill]] }
  0x15   : > { %1622 = sst [smem:[#allocation20_spill]] %s1383_s24  ;;  %s941_s27 = smul.u32 6, %s1386_s25 }
  0x16   : > { %p1393_p9 = pnand %p975_p8, %p59_p3  ;;  %s320_s22 = scalar_lea.sflag [#allocation5], %s1386_s25 }
  0x17   : > { %s323_s13 = scalar_lea.vmem [#allocation4], %s941_s27  ;;  %s1274_s19 = smov 32  }
  0x18   : > { %s332_s21 = sshll.u32 %s323_s13, 4  ;;  %s1275_s20 = smov 2   ;;  %s333_s21 = int_to_ptr.vmem [resolvable:$true] %s332_s21 }
  0x19   : > { %p925_p10 = scmp.ge.s32.totalorder %s1272_s18, 1  ;;  %p363_p11 = scmp.lt.s32.totalorder %s1272_s18, 3 }
  0x1a   : > { %s329_s30 = scalar_lea.hbm %s1623_s0, %s942_s26  ;;  %s352_s0 = scalar_lea.hbm %s1603_s1, %s942_s26 }
  0x1b   : > { %s330_s12 = sshll.u32 %s329_s30, 4  ;;  %p364_p12 = pnand %p925_p10, %p363_p11  ;;  %s331_s12 = int_to_ptr.hbm [resolvable:$true] %s330_s12 }
  0x1c   : > { %971 = dma.hbm_to_vmem [thread:$0]  (!%p1393_p9), %s331_s12, 96, %s333_s21, %s320_s22, %s1274_s19, %s1274_s19, %s1275_s20  }
  0x1d   : > { %s353_s17 = sshll.u32 %s352_s0, 4  ;;  %s346_s30 = scalar_lea.vmem [#allocation7], %s941_s27  ;;  %s354_s17 = int_to_ptr.hbm [resolvable:$true] %s353_s17 }
  0x1e   : > { %s355_s24 = sshll.u32 %s346_s30, 4  ;;  %s343_s13 = scalar_lea.sflag [#allocation8], %s1386_s25  ;;  %s356_s24 = int_to_ptr.vmem [resolvable:$true] %s355_s24 }
  0x1f   : > { %974 = dma.hbm_to_vmem [thread:$0]  (!%p1393_p9), %s354_s17, 96, %s356_s24, %s343_s13, %s1274_s19, %s1274_s19, %s1275_s20  }
  0x20   : > { %367 = sbr.rel (%p364_p12) target bundleno = 769 (0x301), region = 48  ;;  %s369_s15 = sand.u32 (!%p364_p12), 1, %s1256_s14  }
  0x21   : > { %s945_s12 = smul.u32 (!%p364_p12), 6, %s369_s15  ;;  %s370_s21 = scalar_lea.sflag (!%p364_p12), [#allocation5], %s369_s15 }
  0x23   : > { %s373_s22 = scalar_lea.vmem (!%p364_p12), [#allocation4], %s945_s12 }
  0x25   : > { %1235 = dma.done.wait (%p1377_p7), %s370_s21, 96  }
  0x26   : > { %1237 = vsyncadd (%p1377_p7), %s370_s21, 4294967200  ;;  %s380_s0 = scalar_lea.sflag [#allocation8], %s369_s15  ;;  %s1413_s26 = scalar_lea.vmem [#allocation7], %s945_s12 }
  0x27   : > { %1239 = dma.done.wait (%p1377_p7), %s380_s0, 96  }
  0x28   : > { %1241 = vsyncadd (%p1377_p7), %s380_s0, 4294967200  ;;  %p421_p13 = scmp.eq.s32.totalorder %s1264_s16, 0 }
  0x29   : > { %v1276_v0 = vmov (%p421_p13), 0.0  }
  0x2a   : > { %426 = sbr.rel (!%p421_p13) target bundleno = 48 (0x30), region = 60  ;;  %427 = vst [vmem:[#allocation2] sm:$0x3] (%p421_p13), %v1276_v0 }
  0x2b   : > { %428 = vst [vmem:[#allocation2 + $0x2] sm:$0x3] (%p421_p13), %v1276_v0 }
  0x2c   : > { %429 = vst [vmem:[#allocation2 + $0x4] sm:$0x3] (%p421_p13), %v1276_v0 }
  0x2d   : > { %430 = vst [vmem:[#allocation3] sm:$0x3] (%p421_p13), %v1276_v0 }
  0x2e   : > { %431 = vst [vmem:[#allocation3 + $0x2] sm:$0x3] (%p421_p13), %v1276_v0 }
  0x2f   : > { %432 = vst [vmem:[#allocation3 + $0x4] sm:$0x3] %v1276_v0 }
  0x30 PF: > { %v433_v1 = vld [vmem:[%s373_s22] sm:$0x3]  ;;  %v434_v3 = vld [vmem:[%s373_s22 + $0x2] sm:$0x3]  ;;  %v435_v5 = vld [vmem:[%s373_s22 + $0x4] sm:$0x3] }
  0x31   : > { %v927_v2 = vmul.f32 -1.442695, %v433_v1  ;;  %v928_v4 = vmul.f32 -1.442695, %v434_v3  ;;  %v929_v6 = vmul.f32 -1.442695, %v435_v5 }
  0x32   : > { %p520_p0 = scmp.eq.s32.totalorder %s1264_s16, 1  ;;  %v493_v36 = vld [vmem:[%s1413_s26] sm:$0x3]  ;;  %v494_v39 = vld [vmem:[%s1413_s26 + $0x2] sm:$0x3] }
  0x33   : > { %1037 = vpow2.f32 %v927_v2  ;;  %v502_v42 = vld [vmem:[#allocation2] sm:$0x3]  ;;  %v503_v50 = vld [vmem:[#allocation2 + $0x2] sm:$0x3]  ;;  %vm672_vm12 = vcmask (%p520_p0), 25600   ;;  %vm528_vm13 = vcmask (%p520_p0), 1041408  }
  0x34   : > { %1039 = vpow2.f32 %v928_v4  ;;  %v495_v55 = vld [vmem:[%s1413_s26 + $0x4] sm:$0x3]  ;;  %v504_v62 = vld [vmem:[#allocation2 + $0x4] sm:$0x3]  ;;  %v1459_v5 = vld [vmem:[%s1605_s3] sm:$0x3] (%p520_p0) }
  0x35   : > { %1041 = vpow2.f32 %v929_v6  ;;  %v511_v47 = vld [vmem:[#allocation3] sm:$0x3]  ;;  %v673_v6 = vsel (%p520_p0), %vm672_vm12, %v1459_v5, -inf  ;;  %v686_v25 = vld [vmem:[%s1606_s4] sm:$0x3] (%p520_p0)  ;;  %s1277_s21 = smov (%p520_p0), 127  }
  0x36   : > { %v512_v53 = vld [vmem:[#allocation3 + $0x2] sm:$0x3]  ;;  %v513_v0 = vld [vmem:[#allocation3 + $0x4] sm:$0x3]  ;;  %674 = vmax.xlane.f32.xlu0 (%p520_p0), %v673_v6 }
  0x39   : > { %v1038_v7 = vpop.eup %1037 }
  0x3a   : > { %v1040_v8 = vpop.eup %1039  ;;  %v445_v9 = vadd.f32 1.0, %v1038_v7 }
  0x3b   : > { %v1042_v10 = vpop.eup %1041  ;;  %v446_v11 = vadd.f32 1.0, %v1040_v8 }
  0x3c   : > { %1043 = vrcp.f32 %v445_v9  ;;  %v447_v12 = vadd.f32 1.0, %v1042_v10  ;;  %v457_v16 = vand.u32 2147483647, %v445_v9  ;;  %v459_v17 = vand.u32 2147483648, %v445_v9 }
  0x3d   : > { %1045 = vrcp.f32 %v446_v11  ;;  %v474_v19 = vand.u32 2147483648, %v446_v11  ;;  %vm453_vm0 = vweird.f32 %v445_v9  ;;  %vm468_vm2 = vweird.f32 %v446_v11 }
  0x3e   : > { %1047 = vrcp.f32 %v447_v12  ;;  %v472_v23 = vand.u32 2147483647, %v446_v11  ;;  %vm1421_vm4 = vcmp.eq.f32.partialorder %v457_v16, 8.507059e+37  ;;  %v460_v26 = vor.u32 1.1754944e-38, %v459_v17 }
  0x3f   : > { %v475_v30 = vor.u32 1.1754944e-38, %v474_v19  ;;  %v487_v31 = vand.u32 2147483647, %v447_v12  ;;  %v489_v32 = vand.u32 2147483648, %v447_v12  ;;  %vm483_vm7 = vweird.f32 %v447_v12 }
  0x40   : > { %vm473_vm9 = vcmp.eq.f32.partialorder %v472_v23, 8.507059e+37 }
  0x41   : > { %vm1445_vm11 = vcmp.eq.f32.partialorder %v487_v31, 8.507059e+37  ;;  %v490_v46 = vor.u32 1.1754944e-38, %v489_v32 }
  0x42   : > { %v1044_v13 = vpop.eup %1043 }
  0x43   : > { %v1046_v14 = vpop.eup %1045  ;;  %v449_v15 = vmul.f32 %v1044_v13, %v445_v9  ;;  %vm454_vm1 = vweird.f32 %v1044_v13 }
  0x44   : > { %v464_v18 = vmul.f32 %v1046_v14, %v446_v11  ;;  %v1048_v21 = vpop.eup %1047  ;;  %vm469_vm3 = vweird.f32 %v1046_v14  ;;  %vm1425_vm5 = vmor %vm453_vm0, %vm454_vm1 }
  0x45   : > { %v450_v20 = vsub.f32 1.0, %v449_v15  ;;  %v479_v27 = vmul.f32 %v1048_v21, %v447_v12  ;;  %vm1429_vm6 = vmor %vm468_vm2, %vm469_vm3  ;;  %vm484_vm8 = vweird.f32 %v1048_v21 }
  0x46   : > { %v465_v22 = vsub.f32 1.0, %v464_v18  ;;  %vm1441_vm10 = vmor %vm483_vm7, %vm484_vm8 }
  0x47   : > { %v451_v24 = vmul.f32 %v1044_v13, %v450_v20  ;;  %v480_v35 = vsub.f32 1.0, %v479_v27 }
  0x48   : > { %v466_v29 = vmul.f32 %v1046_v14, %v465_v22 }
  0x49   : > { %v452_v33 = vadd.f32 %v1044_v13, %v451_v24  ;;  %v481_v40 = vmul.f32 %v1048_v21, %v480_v35  ;;  %v1049_v24 = vld [vmem:[%s1607_s5] ss:$0 sm:$0xff] (%p520_p0) }
  0x4a   : > { %v467_v37 = vadd.f32 %v1046_v14, %v466_v29 }
  0x4b   : > { %v456_v38 = vsel %vm1425_vm5, %v1044_v13, %v452_v33  ;;  %v482_v51 = vadd.f32 %v1048_v21, %v481_v40 }
  0x4c   : > { %v461_v41 = vsel %vm1421_vm4, %v460_v26, %v456_v38  ;;  %v471_v43 = vsel %vm1429_vm6, %v1046_v14, %v467_v37  ;;  %v1480_v26 = vmul.f32 (%p520_p0), %v1049_v24, %v686_v25 }
  0x4d   : > { %v496_v48 = vmul.f32 %v493_v36, %v461_v41  ;;  %v476_v49 = vsel %vm473_vm9, %v475_v30, %v471_v43  ;;  %v499_v52 = vadd.f32 %v493_v36, %v461_v41  ;;  %v486_v58 = vsel %vm1441_vm10, %v1048_v21, %v482_v51 }
  0x4e   : > { %v497_v54 = vmul.f32 %v494_v39, %v476_v49  ;;  %v500_v56 = vadd.f32 %v494_v39, %v476_v49  ;;  %v491_v61 = vsel %vm1445_vm11, %v490_v46, %v486_v58  ;;  %v697_v27 = vsel (%p520_p0), %vm672_vm12, %v1480_v26, 0.0 }
  0x4f   : > { %v505_v57 = vadd.f32 %v502_v42, %v496_v48  ;;  %v514_v59 = vadd.f32 %v511_v47, %v499_v52  ;;  %v498_v1 = vmul.f32 %v495_v55, %v491_v61  ;;  %v501_v2 = vadd.f32 %v495_v55, %v491_v61 }
  0x50   : > { %v506_v60 = vadd.f32 %v503_v50, %v497_v54  ;;  %v515_v63 = vadd.f32 %v512_v53, %v500_v56  ;;  %vm653_vm10 = vcmask (%p520_p0), 1041409   ;;  %vm655_vm11 = vcmask (%p520_p0), 1042434  }
  0x51   : > { %508 = vst [vmem:[#allocation2] sm:$0x3] %v505_v57  ;;  %v507_v3 = vadd.f32 %v504_v62, %v498_v1  ;;  %v516_v4 = vadd.f32 %v513_v0, %v501_v2 }
  0x52   : > { %509 = vst [vmem:[#allocation2 + $0x2] sm:$0x3] %v506_v60  ;;  %524 = sbr.rel (!%p520_p0) target bundleno = 756 (0x2f4), region = 64 }
  0x53   : > { %517 = vst [vmem:[#allocation3] sm:$0x3] %v514_v59 }
  0x54   : > { %518 = vst [vmem:[#allocation3 + $0x2] sm:$0x3] %v515_v63 }
  0x55   : > { %510 = vst [vmem:[#allocation2 + $0x4] sm:$0x3] %v507_v3 }
  0x56   : > { %519 = vst [vmem:[#allocation3 + $0x4] sm:$0x3] %v516_v4 }
  0x58   : > { %v525_v13 = vld [vmem:[#allocation2] sm:$0x3] }
  0x59   : > { %v529_v14 = vsel %vm528_vm13, %v525_v13, 0.0  ;;  %v526_v22 = vld [vmem:[#allocation2 + $0x2] sm:$0x3] }
  0x5a   : > { %v559_v7 = vld [vmem:[#allocation3] sm:$0x3]  ;;  %v532_v23 = vsel %vm528_vm13, %v526_v22, 0.0 }
  0x5b   : > { %v562_v8 = vsel %vm528_vm13, %v559_v7, 0.0  ;;  %v560_v11 = vld [vmem:[#allocation3 + $0x2] sm:$0x3] }
  0x5c   : > { %563 = vadd.xlane.f32.xlu1 %v562_v8  ;;  %v565_v12 = vsel %vm528_vm13, %v560_v11, 0.0  ;;  %v527_v15 = vld [vmem:[#allocation2 + $0x4] sm:$0x3] }
  0x5d   : > { %v561_v9 = vld [vmem:[#allocation3 + $0x4] sm:$0x3]  ;;  %v535_v16 = vsel %vm528_vm13, %v527_v15, 0.0 }
  0x5e   : > { %v568_v10 = vsel %vm528_vm13, %v561_v9, 0.0 }
  0x5f   : > { %569 = vadd.xlane.f32.xlu2 %v568_v10 }
  0x64   : > { %566 = vadd.xlane.f32.xlu1 %v565_v12 }
  0x67   : > { %530 = vadd.xlane.f32.xlu2 %v529_v14 }
  0x6c   : > { %536 = vadd.xlane.f32.xlu1 %v535_v16 }
  0xa9   : > { %v1468_v17 = vpop.xlane.xlu0 %674 }
  0xaa   : > { %v676_v18 = vsub.f32 %v1459_v5, %v1468_v17 }
  0xac   : > { %v677_v19 = vmul.f32 1.442695, %v676_v18 }
  0xae   : > { %1050 = vpow2.f32 %v677_v19 }
  0xb4   : > { %v1051_v20 = vpop.eup %1050 }
  0xb5   : > { %v679_v21 = vsel %vm672_vm12, %v1051_v20, 0.0 }
  0xb6   : > { %680 = vadd.xlane.f32.xlu0 %v679_v21 }
  0xbe   : > { %533 = vadd.xlane.f32.xlu0 %v532_v23 }
  0xc6   : > { %698 = vadd.xlane.f32.xlu0 %v697_v27 }
  0xcf   : > { %v564_v28 = vpop.xlane.xlu1 %563 }
  0xd0   : > { %v571_v29 = vsel %vm528_vm13, %v564_v28, 0.0 }
  0xd1   : > { %v572_v31 = vrot.slane %v571_v29, 4 }
  0xd2   : > { %v570_v30 = vpop.xlane.xlu2 %569 }
  0xd3   : > { %v585_v32 = vsel %vm528_vm13, %v570_v30, 0.0  ;;  %v573_v34 = vadd.f32 %v572_v31, %v571_v29 }
  0xd4   : > { %v586_v33 = vrot.slane %v585_v32, 4 }
  0xd5   : > { %v574_v36 = vrot.slane %v573_v34, 2 }
  0xd6   : > { %v587_v35 = vadd.f32 %v586_v33, %v585_v32 }
  0xd7   : > { %v575_v38 = vadd.f32 %v574_v36, %v573_v34  ;;  %v567_v39 = vpop.xlane.xlu1 %566 }
  0xd8   : > { %v588_v37 = vrot.slane %v587_v35, 2  ;;  %v578_v40 = vsel %vm528_vm13, %v567_v39, 0.0 }
  0xd9   : > { %v576_v42 = vrot.slane %v575_v38, 1  ;;  %v579_v43 = vrot.slane %v578_v40, 4 }
  0xda   : > { %v589_v41 = vadd.f32 %v588_v37, %v587_v35  ;;  %v531_v47 = vpop.xlane.xlu2 %530 }
  0xdb   : > { %v577_v45 = vadd.f32 %v576_v42, %v575_v38  ;;  %v580_v46 = vadd.f32 %v579_v43, %v578_v40  ;;  %v538_v49 = vsel %vm528_vm13, %v531_v47, 0.0 }
  0xdc   : > { %v590_v44 = vrot.slane %v589_v41, 1  ;;  %v539_v52 = vrot.slane %v538_v49, 4 }
  0xdd   : > { %v598_v50 = vadd.f32 1e-06, %v577_v45  ;;  %v581_v51 = vrot.slane %v580_v46, 2 }
  0xde   : > { %v591_v48 = vadd.f32 %v590_v44, %v589_v41  ;;  %v540_v57 = vadd.f32 %v539_v52, %v538_v49 }
  0xdf   : > { %v582_v55 = vadd.f32 %v581_v51, %v580_v46  ;;  %v537_v56 = vpop.xlane.xlu1 %536  ;;  %v610_v63 = vand.u32 2147483647, %v598_v50  ;;  %vm606_vm14 = vweird.f32 %v598_v50  ;;  %v612_v8 = vand.u32 2147483648, %v598_v50 }
  0xe0   : > { %v600_v54 = vadd.f32 1e-06, %v591_v48  ;;  %v552_v58 = vsel %vm528_vm13, %v537_v56, 0.0  ;;  %v541_v61 = vrot.slane %v540_v57, 2 }
  0xe1   : > { %v583_v59 = vrot.slane %v582_v55, 1  ;;  %v553_v60 = vrot.slane %v552_v58, 4  ;;  %vm1492_vm15 = vcmp.eq.f32.partialorder %v610_v63, 8.507059e+37  ;;  %v613_v30 = vor.u32 1.1754944e-38, %v612_v8 }
  0xe2   : > { %v542_v1 = vadd.f32 %v541_v61, %v540_v57  ;;  %v640_v18 = vand.u32 2147483647, %v600_v54  ;;  %vm636_vm1 = vweird.f32 %v600_v54  ;;  %v642_v24 = vand.u32 2147483648, %v600_v54 }
  0xe3   : > { %v584_v62 = vadd.f32 %v583_v59, %v582_v55  ;;  %v554_v0 = vadd.f32 %v553_v60, %v552_v58 }
  0xe4   : > { %v543_v9 = vrot.slane %v542_v1, 1  ;;  %vm1505_vm4 = vcmp.eq.f32.partialorder %v640_v18, 8.507059e+37  ;;  %v643_v40 = vor.u32 1.1754944e-38, %v642_v24 }
  0xe5   : > { %v1489_v3 = vadd.f32 1e-06, %v584_v62  ;;  %v555_v13 = vrot.slane %v554_v0, 2 }
  0xe6   : > { %v544_v23 = vadd.f32 %v543_v9, %v542_v1 }
  0xe7   : > { %v556_v28 = vadd.f32 %v555_v13, %v554_v0  ;;  %v627_v38 = vand.u32 2147483648, %v1489_v3  ;;  %vm621_vm6 = vweird.f32 %v1489_v3  ;;  %v625_v46 = vand.u32 2147483647, %v1489_v3 }
  0xe8   : > { %v592_v35 = vmul.f32 2.0, %v544_v23 }
  0xe9   : > { %v557_v36 = vrot.slane %v556_v28, 1  ;;  %vm626_vm9 = vcmp.eq.f32.partialorder %v625_v46, 8.507059e+37 }
  0xea   : > { %v595_v48 = vadd.f32 1e-06, %v592_v35 }
  0xeb   : > { %v558_v43 = vadd.f32 %v557_v36, %v556_v28 }
  0xed   : > { %v594_v49 = vmul.f32 2.0, %v558_v43 }
  0xef   : > { %v597_v55 = vadd.f32 1e-06, %v594_v49 }
 0x129   : > { %v681_v53 = vpop.xlane.xlu0 %680 }
 0x12a   : > { %1052 = vlog2.f32 %v681_v53  ;;  %v628_v53 = vor.u32 1.1754944e-38, %v627_v38 }
 0x12b   : > { %1054 = vrcp.f32 %v598_v50 }
 0x12c   : > { %1056 = vrcp.f32 %v600_v54 }
 0x12d   : > { %1058 = vrcp.f32 %v1489_v3 }
 0x130   : > { %v1053_v2 = vpop.eup %1052 }
 0x131   : > { %v1055_v4 = vpop.eup %1054  ;;  %v683_v6 = vmul.f32 0.6931472, %v1053_v2  ;;  %v534_v7 = vpop.xlane.xlu0 %533 }
 0x132   : > { %v1057_v10 = vpop.eup %1056  ;;  %v602_v11 = vmul.f32 %v1055_v4, %v598_v50  ;;  %v545_v16 = vsel %vm528_vm13, %v534_v7, 0.0  ;;  %vm607_vm0 = vweird.f32 %v1055_v4  ;;  %vm700_vm13 = vcmask 1024  }
 0x133   : > { %v684_v14 = vadd.f32 %v683_v6, %v1468_v17  ;;  %v632_v15 = vmul.f32 %v1057_v10, %v600_v54  ;;  %v546_v20 = vrot.slane %v545_v16, 4  ;;  %vm637_vm2 = vweird.f32 %v1057_v10  ;;  %vm1501_vm3 = vmor %vm606_vm14, %vm607_vm0 }
 0x134   : > { %v603_v19 = vsub.f32 1.0, %v602_v11  ;;  %vm1513_vm5 = vmor %vm636_vm1, %vm637_vm2  ;;  %vm767_vm14 = vcmask 0  }
 0x135   : > { %v685_v21 = vsub.f32 %v1459_v5, %v684_v14  ;;  %v633_v22 = vsub.f32 1.0, %v632_v15  ;;  %v547_v25 = vadd.f32 %v546_v20, %v545_v16  ;;  %v1059_v5 = vpop.eup %1058 }
 0x136   : > { %v604_v27 = vmul.f32 %v1055_v4, %v603_v19  ;;  %vm622_vm7 = vweird.f32 %v1059_v5 }
 0x137   : > { %v692_v29 = vmul.f32 %v1480_v26, %v685_v21  ;;  %v634_v31 = vmul.f32 %v1057_v10, %v633_v22  ;;  %v548_v33 = vrot.slane %v547_v25, 2  ;;  %v617_v26 = vmul.f32 %v1059_v5, %v1489_v3  ;;  %vm623_vm8 = vmor %vm621_vm6, %vm622_vm7 }
 0x138   : > { %v605_v34 = vadd.f32 %v1055_v4, %v604_v27 }
 0x139   : > { %v693_v37 = vsel %vm672_vm12, %v692_v29, 0.0  ;;  %v549_v41 = vadd.f32 %v548_v33, %v547_v25  ;;  %v635_v44 = vadd.f32 %v1057_v10, %v634_v31  ;;  %v618_v45 = vsub.f32 1.0, %v617_v26 }
 0x13a   : > { %694 = vadd.xlane.f32.xlu2 %v693_v37  ;;  %v609_v42 = vsel %vm1501_vm3, %v1055_v4, %v605_v34  ;;  %v649_v4 = vld [vmem:[%s1604_s2] sm:$0x7]  ;;  %vm659_vm12 = vcmask 2048  }
 0x13b   : > { %v550_v47 = vrot.slane %v549_v41, 1  ;;  %v639_v50 = vsel %vm1513_vm5, %v1057_v10, %v635_v44  ;;  %v619_v51 = vmul.f32 %v1059_v5, %v618_v45  ;;  %v614_v52 = vsel %vm1492_vm15, %v613_v30, %v609_v42  ;;  %v699_v10 = vpop.xlane.xlu0 %698  ;;  %v738_v37 = vld [vmem:[%s1608_s6] sm:$0x1] }
 0x13c   : > { %v644_v56 = vsel %vm1505_vm4, %v643_v40, %v639_v50  ;;  %v615_v59 = vmul.f32 %v614_v52, %v595_v48  ;;  %v712_v11 = vsel %vm700_vm13, %v699_v10, 0.0  ;;  %v740_v26 = vmul.f32 %v738_v37, %v738_v37 }
 0x13d   : > { %v551_v54 = vadd.f32 %v550_v47, %v549_v41  ;;  %v620_v57 = vadd.f32 %v1059_v5, %v619_v51  ;;  %v645_v61 = vmul.f32 %v644_v56, %v597_v55  ;;  %713 = vadd.xlane.f32.xlu0 %v712_v11 }
 0x13e   : > { %v646_v1 = vsub.f32 1.0, %v615_v59  ;;  %1060 = vrcp.f32 %v740_v26  ;;  %vm746_vm15 = vweird.f32 %v740_v26  ;;  %v752_v49 = vand.u32 2147483648, %v740_v26 }
 0x13f   : > { %v593_v58 = vmul.f32 2.0, %v551_v54  ;;  %v624_v60 = vsel %vm623_vm8, %v1059_v5, %v620_v57  ;;  %v648_v2 = vsub.f32 1.0, %v645_v61  ;;  %v750_v52 = vand.u32 2147483647, %v740_v26 }
 0x140   : > { %v629_v62 = vsel %vm626_vm9, %v628_v53, %v624_v60  ;;  %v753_v56 = vor.u32 1.1754944e-38, %v752_v49 }
 0x141   : > { %v596_v63 = vadd.f32 1e-06, %v593_v58  ;;  %vm751_vm6 = vcmp.eq.f32.partialorder %v750_v52, 8.507059e+37 }
 0x143   : > { %v630_v0 = vmul.f32 %v629_v62, %v596_v63 }
 0x144   : > { %v1061_v38 = vpop.eup %1060 }
 0x145   : > { %v647_v3 = vsub.f32 1.0, %v630_v0  ;;  %v742_v40 = vmul.f32 %v1061_v38, %v740_v26  ;;  %vm747_vm0 = vweird.f32 %v1061_v38 }
 0x146   : > { %vm1544_vm2 = vmor %vm746_vm15, %vm747_vm0 }
 0x147   : > { %v654_v6 = vsel %vm653_vm10, %v647_v3, %v646_v1  ;;  %v743_v41 = vsub.f32 1.0, %v742_v40 }
 0x148   : > { %v656_v7 = vsel %vm655_vm11, %v648_v2, %v654_v6 }
 0x149   : > { %v658_v8 = vmul.f32 %v656_v7, %v649_v4  ;;  %v744_v44 = vmul.f32 %v1061_v38, %v743_v41 }
 0x14b   : > { %v660_v9 = vsel %vm659_vm12, %v658_v8, 0.0  ;;  %771 = vst.msk [vmem:[%s1612_s10] sm:$0x7] %vm659_vm12, %v658_v8  ;;  %v745_v50 = vadd.f32 %v1061_v38, %v744_v44 }
 0x14c   : > { %661 = vadd.xlane.f32.xlu1 %v660_v9 }
 0x14d   : > { %v749_v59 = vsel %vm1544_vm2, %v1061_v38, %v745_v50 }
 0x14e   : > { %v754_v63 = vsel %vm751_vm6, %v753_v56, %v749_v59 }
 0x1ad   : > { %v695_v12 = vpop.xlane.xlu2 %694 }
 0x1ae   : > { %v696_v13 = vsub.f32 0.0, %v695_v12 }
 0x1b0   : > { %v701_v14 = vsel %vm700_vm13, %v696_v13, 0.0  ;;  %v714_v24 = vpop.xlane.xlu0 %713 }
 0x1b1   : > { %702 = vadd.xlane.f32.xlu2 %v701_v14  ;;  %v715_v25 = vrot.slane %v714_v24, 4 }
 0x1b3   : > { %v716_v27 = vadd.f32 %v715_v25, %v714_v24 }
 0x1b5   : > { %v717_v28 = vrot.slane %v716_v27, 2 }
 0x1b7   : > { %v718_v31 = vadd.f32 %v717_v28, %v716_v27 }
 0x1b9   : > { %v719_v33 = vrot.slane %v718_v31, 1 }
 0x1bb   : > { %v720_v36 = vadd.f32 %v719_v33, %v718_v31 }
 0x1bf   : > { %v662_v15 = vpop.xlane.xlu1 %661 }
 0x1c0   : > { %v663_v16 = vrot.slane %v662_v15, 4 }
 0x1c2   : > { %v664_v18 = vadd.f32 %v663_v16, %v662_v15 }
 0x1c4   : > { %v665_v19 = vrot.slane %v664_v18, 2 }
 0x1c6   : > { %v666_v20 = vadd.f32 %v665_v19, %v664_v18 }
 0x1c8   : > { %v667_v21 = vrot.slane %v666_v20, 1 }
 0x1ca   : > { %v668_v22 = vadd.f32 %v667_v21, %v666_v20 }
 0x1cc   : > { %946 = vpush %v668_v22 }
 0x1fd   : > { %s1533_s28 = spop %946 }
 0x1fe   : > { %v670_v23 = vstv %s1533_s28 }
 0x1ff   : > { %769 = vst.msk [vmem:[#allocation10] sm:$0x1] %vm767_vm14, %v670_v23  ;;  %v739_v3 = vmul.f32 0.5, %v670_v23 }
 0x201   : > { %v755_v4 = vmul.f32 %v754_v63, %v739_v3 }
 0x224   : > { %v703_v29 = vpop.xlane.xlu2 %702 }
 0x225   : > { %v704_v17 = vrot.slane %v703_v29, 4 }
 0x227   : > { %v705_v30 = vadd.f32 %v704_v17, %v703_v29 }
 0x229   : > { %v706_v32 = vrot.slane %v705_v30, 2 }
 0x22b   : > { %v707_v5 = vadd.f32 %v706_v32, %v705_v30 }
 0x22d   : > { %v708_v34 = vrot.slane %v707_v5, 1 }
 0x22f   : > { %v709_v35 = vadd.f32 %v708_v34, %v707_v5 }
 0x231   : > { %948 = vpush %v709_v35 }
 0x232   : > { %950 = vpush %v720_v36 }
 0x262   : > { %s1542_s13 = spop %948 }
 0x263   : > { %s951_s12 = spop %950  ;;  %v711_v57 = vstv %s1542_s13 }
 0x264   : > { %v722_v39 = vstv %s951_s12 }
 0x265   : > { %1062 = vrcp.f32 %v722_v39  ;;  %v734_v46 = vand.u32 2147483648, %v722_v39  ;;  %v732_v48 = vand.u32 2147483647, %v722_v39  ;;  %vm728_vm3 = vweird.f32 %v722_v39 }
 0x266   : > { %1064 = vlog2.f32 %v738_v37 }
 0x267   : > { %v735_v54 = vor.u32 1.1754944e-38, %v734_v46  ;;  %vm733_vm5 = vcmp.eq.f32.partialorder %v732_v48, 8.507059e+37 }
 0x26b   : > { %v1063_v42 = vpop.eup %1062 }
 0x26c   : > { %v724_v43 = vmul.f32 %v1063_v42, %v722_v39  ;;  %vm729_vm1 = vweird.f32 %v1063_v42  ;;  %v1065_v61 = vpop.eup %1064 }
 0x26d   : > { %vm730_vm4 = vmor %vm728_vm3, %vm729_vm1  ;;  %v757_v0 = vmul.f32 0.6931472, %v1065_v61 }
 0x26e   : > { %v725_v45 = vsub.f32 1.0, %v724_v43 }
 0x26f   : > { %v758_v6 = vadd.f32 %v757_v0, %v755_v4 }
 0x270   : > { %v726_v47 = vmul.f32 %v1063_v42, %v725_v45 }
 0x272   : > { %v727_v53 = vadd.f32 %v1063_v42, %v726_v47 }
 0x274   : > { %v731_v55 = vsel %vm730_vm4, %v1063_v42, %v727_v53 }
 0x275   : > { %v736_v58 = vsel %vm733_vm5, %v735_v54, %v731_v55 }
 0x276   : > { %v737_v60 = vmul.f32 %v736_v58, %v711_v57 }
 0x278   : > { %770 = vst.msk [vmem:[#allocation12] sm:$0x1] %vm767_vm14, %v737_v60  ;;  %v759_v62 = vmul.f32 0.5, %v737_v60 }
 0x27a   : > { %v760_v1 = vmul.f32 %v759_v62, %v754_v63 }
 0x27c   : > { %v761_v2 = vadd.f32 %v760_v1, %v757_v0 }
 0x27e   : > { %763 = vrot.lane.b32.xlu1 %v761_v2, %s1277_s21 }
 0x2f0   : > { %v764_v7 = vpop.permute.xlu1 %763 }
 0x2f1   : > { %v766_v8 = vadd.f32 %v764_v7, %v758_v6 }
 0x2f3   : > { %768 = vst.msk [vmem:[#allocation9] sm:$0x1] %vm767_vm14, %v766_v8 }
 0x2f4 PF: > { %s1645_s22 = sadd.s32 4294967295, %s1272_s18   ;;  %s1278_s26 = smov [#allocation10]  }
 0x2f5   : > { %p1557_p1 = scmp.eq.s32.totalorder %s1645_s22, 1  ;;  %s790_s15 = sshll.u32 %s1278_s26, 4  ;;  %s791_s15 = int_to_ptr.vmem [resolvable:$true] %s790_s15 }
 0x2f6   : > { %s792_s19 = sshll.u32 %s1610_s8, 4  ;;  %s1279_s20 = smov [#allocation9]   ;;  %s793_s19 = int_to_ptr.hbm [resolvable:$true] %s792_s19 }
 0x2f7   : > { %959 = dma.vmem_to_hbm [thread:$0]  (%p1557_p1), %s791_s15, 16, %s793_s19, [#allocation11]  }
 0x2f8   : > { %s778_s23 = sshll.u32 %s1279_s20, 4  ;;  %s780_s27 = sshll.u32 %s1609_s7, 4  ;;  %s779_s23 = int_to_ptr.vmem [resolvable:$true] %s778_s23  ;;  %s781_s27 = int_to_ptr.hbm [resolvable:$true] %s780_s27 }
 0x2f9   : > { %957 = dma.vmem_to_hbm [thread:$0]  (%p1557_p1), %s779_s23, 16, %s781_s27, [#allocation6]  }
 0x2fa   : > { %s804_s29 = sshll.u32 %s1611_s9, 4  ;;  %s1280_s30 = smov [#allocation12]   ;;  %s805_s29 = int_to_ptr.hbm [resolvable:$true] %s804_s29 }
 0x2fb   : > { %s802_s13 = sshll.u32 %s1280_s30, 4  ;;  %s803_s13 = int_to_ptr.vmem [resolvable:$true] %s802_s13 }
 0x2fc   : > { %961 = dma.vmem_to_hbm [thread:$0]  (%p1557_p1), %s803_s13, 16, %s805_s29, [#allocation11]  }
 0x2fd   : > { %1243 = dma.done.wait (%p1557_p1), [#allocation6], 16  }
 0x2fe   : > { %1245 = vsyncadd (%p1557_p1), [#allocation6], 4294967280 }
 0x2ff   : > { %1247 = dma.done.wait (%p1557_p1), [#allocation11], 32  }
 0x300   : > { %1249 = vsyncadd (%p1557_p1), [#allocation11], 4294967264 }
 0x301 PF: > { %s29_s18 = sadd.s32 1, %s1272_s18   ;;  %s1647_s12 = sld [smem:[#allocation17_spill]] }
 0x302   : > { %p26_p2 = scmp.ge.s32.totalorder %s29_s18, 4   ;;  %s1648_s15 = sld [smem:[#allocation20_spill]] }
 0x303   : > { %s1649_s16 = sld [smem:[#allocation18_spill]]  ;;  %s1651_s13 = smov %s1256_s14 }
 0x304   : > { %s1650_s17 = sld [smem:[#allocation19_spill]]  ;;  %28 = sbr.rel (!%p26_p2) target bundleno = 10 (0xa), region = 130 }
 0x307   : > { %s1652_s14 = smov %s1647_s12 }
 0x309   :  { %834 = vsyncpa [#allocation5], 1 }
 0x30a   :  { %836 = vsyncpa [#allocation5 + $0x1], 1 }
 0x30b   :  { %837 = vsyncpa [#allocation8], 1 }
 0x30c   :  { %839 = vsyncpa [#allocation8 + $0x1], 1 }
 0x30d   :  { %840 = vsyncpa [#allocation6], 1 }
 0x30e   :  { %842 = vsyncpa [#allocation6 + $0x1], 1 }
 0x30f   :  { %843 = vsyncpa [#allocation11], 1 }

</bundles_post_ra>
